<compile_context>
chip_gen: v7x
topology: tpu7x:2x2x1
jax: 0.10.0
libtpu: 0.0.40
codegen_flags: <defaults>
</compile_context>

<pallas_src>
import jax
import jax.numpy as jnp
from jax.experimental import pallas as pl
from jax.experimental.pallas import tpu as pltpu

# MXU operand dtype (accumulation is always f32).
_MXU_DTYPE = jnp.bfloat16


def _round_up(x, m):
    return (x + m - 1) // m * m


# ----------------------------------------------------------------------------
# Fused kernel: GCLSTM cell (K=1, peepholes) + relu + Linear + node gather
#               + NodePredictor MLP.  Node axis on lanes, whole node set in VMEM.
# ----------------------------------------------------------------------------
def _gclstm_fused_kernel(xh_ref, c_ref, ids_ref,
                         w_ref, b_ref, wc_ref,
                         lin_w_ref, lin_b_ref,
                         d1_w_ref, d1_b_ref, d2_w_ref, d2_b_ref,
                         state_ref, pred_ref):
    de, n = c_ref.shape
    mm = _MXU_DTYPE

    c_t = c_ref[...]                                   # (De, N) f32

    # (1) all 4 gate pre-activations with ONE MXU matmul; node axis on lanes.
    #     w_ref (4De, Din+De) bf16, xh_ref (Din+De, N) bf16 -> (4De, N) f32.
    gates = jnp.dot(w_ref[...], xh_ref[...],
                    preferred_element_type=jnp.float32) + b_ref[...]

    # (2) gate math (f32 on VPU/EUP).  wc layout (sublanes) = [i ; f ; 0 ; o].
    #     i/f merged into a single wide sigmoid over a (2De, N) block.
    wc = wc_ref[...]                                   # (4De, 1) f32
    c2 = jnp.concatenate([c_t, c_t], axis=0)           # (2De, N) sublane stack
    if_g = jax.nn.sigmoid(gates[:2 * de] + wc[:2 * de] * c2)
    i_g, f_g = if_g[:de], if_g[de:]
    t_g = jnp.tanh(gates[2 * de:3 * de])
    c_new = f_g * c_t + i_g * t_g
    o_g = jax.nn.sigmoid(gates[3 * de:] + wc[3 * de:] * c_new)
    h_new = o_g * jnp.tanh(c_new)

    # (3) RecurrentGCN tail: relu + Linear(embed, embed), transposed orientation.
    z = jnp.dot(lin_w_ref[...], jnp.maximum(h_new, 0.0).astype(mm),
                preferred_element_type=jnp.float32) + lin_b_ref[...]   # (De, N)

    # (4) packed state [h_new ; c_new ; z] -> one lane-dense (3De, N) store.
    state_ref[...] = jnp.concatenate([h_new, c_new, z], axis=0)

    # (5) decoder fused in: exact column gather z[:, node_ids] via a bf16 one-hot
    #     matmul (0/1 selectors exact), then the 2-layer MLP; output lane-dense.
    ids = ids_ref[...]                                                 # (1, Mp) int32
    rows = jax.lax.broadcasted_iota(jnp.int32, (n, ids.shape[1]), 0)   # (N, Mp)
    onehot = (rows == ids).astype(mm)                                  # padded ids = -1
    z_sel = jnp.dot(z.astype(mm), onehot,
                    preferred_element_type=jnp.float32)                # (De, Mp)
    hid = jnp.maximum(
        jnp.dot(d1_w_ref[...], z_sel.astype(mm),
                preferred_element_type=jnp.float32) + d1_b_ref[...], 0.0)
    pred_ref[...] = jnp.dot(d2_w_ref[...], hid.astype(mm),
                            preferred_element_type=jnp.float32) + d2_b_ref[...]


def gclstm_fused_forward(xh_t, c_t, ids_row, kp):
    de, n = c_t.shape
    m_pad = ids_row.shape[1]
    p_rows = kp["d2_w"].shape[0]

    operands = (xh_t, c_t, ids_row, kp["w"], kp["b"], kp["wc"],
                kp["lin_w"], kp["lin_b"], kp["d1_w"], kp["d1_b"],
                kp["d2_w"], kp["d2_b"])
    # N=128 fits comfortably in VMEM -> one block / one grid step.
    return pl.pallas_call(
        _gclstm_fused_kernel,
        out_shape=(jax.ShapeDtypeStruct((3 * de, n), jnp.float32),
                   jax.ShapeDtypeStruct((p_rows, m_pad), jnp.float32)),
        grid=(1,),
        in_specs=[pl.BlockSpec(a.shape, lambda i: (0, 0)) for a in operands],
        out_specs=(pl.BlockSpec((3 * de, n), lambda i: (0, 0)),
                   pl.BlockSpec((p_rows, m_pad), lambda i: (0, 0))),
        compiler_params=pltpu.CompilerParams(
            dimension_semantics=("arbitrary",)),
    )(*operands)


# ----------------------------------------------------------------------------
# Parameter construction (deterministic, glorot-like).
# Stores f32 "math" params (reference orientation) + kernel-packed params
# (node-on-lanes transposed layout, MXU operands pre-cast to bf16).
# ----------------------------------------------------------------------------
def _glorot(key, shape):
    fan_in, fan_out = shape[-2], shape[-1]
    limit = jnp.sqrt(6.0 / (fan_in + fan_out))
    return jax.random.uniform(key, shape, jnp.float32, -limit, limit)


def make_params(key, node_dim, embed_dim, num_classes):
    ks = jax.random.split(key, 16)
    de = embed_dim
    p = {}
    # GCLSTM input weights W_i/W_f/W_c/W_o : (node_dim, de) each, gate order [i,f,c,o]
    wx = jnp.concatenate([_glorot(ks[i], (node_dim, de)) for i in range(4)], axis=1)
    # ChebConv(K=1) Theta_0 per gate (PyG stores (out,in)); applied as H @ Theta^T
    wh = jnp.concatenate([_glorot(ks[4 + i], (de, de)).T for i in range(4)], axis=1)
    p["w"] = jnp.concatenate([wx, wh], axis=0)                     # (node_dim+de, 4de)
    # peephole weights w_c_i / w_c_f / w_c_o (candidate-cell gate has no peephole)
    p["wc"] = jnp.concatenate([_glorot(ks[8], (1, de)),
                               _glorot(ks[9], (1, de)),
                               jnp.zeros((1, de), jnp.float32),
                               _glorot(ks[10], (1, de))], axis=1)  # (1, 4de)
    # bias = ChebConv bias + gate bias (torch init: zeros); small non-zero values
    p["b"] = jnp.concatenate(
        [0.01 * (i + 1) * jnp.ones((1, de), jnp.float32) for i in range(4)], axis=1)
    # RecurrentGCN.linear (reference applies z = relu(h) @ W^T + b)
    p["lin_w_t"] = _glorot(ks[11], (de, de)).T
    p["lin_b"] = 0.02 * jnp.ones((1, de), jnp.float32)
    # NodePredictor
    p["dec_w1_t"] = _glorot(ks[12], (de, de)).T
    p["dec_b1"] = 0.03 * jnp.ones((1, de), jnp.float32)
    w2 = _glorot(ks[13], (num_classes, de))                        # torch (out, in)
    p["dec_w2_t"] = w2.T                                           # (de, num_classes)
    p["dec_b2"] = 0.04 * jnp.ones((1, num_classes), jnp.float32)
    p["num_classes"] = num_classes

    # ---- kernel-packed params: transposed (node axis on lanes), bf16 MXU operands,
    #      f32 column biases.  Decoder out rows padded to 16 sublanes. ----
    p_rows = _round_up(num_classes, 16)
    p["kernel"] = {
        "w":     p["w"].T.astype(_MXU_DTYPE),                      # (4de, node_dim+de)
        "b":     p["b"].T,                                         # (4de, 1)
        "wc":    p["wc"].T,                                        # (4de, 1)
        "lin_w": p["lin_w_t"].T.astype(_MXU_DTYPE),                # (de, de)
        "lin_b": p["lin_b"].T,                                     # (de, 1)
        "d1_w":  p["dec_w1_t"].T.astype(_MXU_DTYPE),               # (de, de)
        "d1_b":  p["dec_b1"].T,                                    # (de, 1)
        "d2_w":  jnp.zeros((p_rows, de), _MXU_DTYPE)
                    .at[:num_classes].set(w2.astype(_MXU_DTYPE)),  # (p_rows, de)
        "d2_b":  jnp.zeros((p_rows, 1), jnp.float32)
                    .at[:num_classes].set(p["dec_b2"].T),          # (p_rows, 1)
    }
    return p


# ----------------------------------------------------------------------------
# Full model wrapper (matches GCLSTM_Model.forward signature semantics)
# ----------------------------------------------------------------------------
def gclstm_model_forward(params, node_feat, src, dst, edge_weight, node_ids,
                         h_0=None, c_0=None):
    n = node_feat.shape[0]
    d_e = params["lin_b"].shape[1]
    num_classes = params["num_classes"]
    # torch GCLSTM: H/C default to zeros when None
    h = jnp.zeros((n, d_e), jnp.float32) if h_0 is None else h_0
    c = jnp.zeros((n, d_e), jnp.float32) if c_0 is None else c_0
    # edge_index = stack([src, dst]) has no effect for K=1 ChebConv -> unused.
    del src, dst, edge_weight

    # layout plumbing (outside the kernel): node axis -> lanes; gate-matmul LHS in bf16
    xh_t = jnp.concatenate([node_feat.T, h.T], axis=0).astype(_MXU_DTYPE)  # (Din+De, N)
    c_t = c                                                                 # (N, De)
    c_t = c_t.T                                                             # (De, N) f32

    # batch.global_to_local(batch.node_ids): ids assumed already local row indices.
    m = node_ids.shape[0]
    m_pad = _round_up(m, 128)
    ids_row = jnp.full((1, m_pad), -1, jnp.int32).at[0, :m].set(
        node_ids.astype(jnp.int32))

    state, pred_t = gclstm_fused_forward(xh_t, c_t, ids_row, params["kernel"])

    h_new = state[:d_e, :].T
    c_new = state[d_e:2 * d_e, :].T
    pred = pred_t[:num_classes, :m].T
    return pred, h_new, c_new


# ----------------------------------------------------------------------------
# Plain-JAX f32 reference of the same math (self-consistency check)
# ----------------------------------------------------------------------------
def _reference_forward(params, node_feat, node_ids, h, c):
    d_e = params["lin_b"].shape[1]
    xh = jnp.concatenate([node_feat, h], axis=1)
    gates = xh @ params["w"] + params["b"]
    wc = params["wc"]
    i_g = jax.nn.sigmoid(gates[:, :d_e] + wc[:, :d_e] * c)
    f_g = jax.nn.sigmoid(gates[:, d_e:2 * d_e] + wc[:, d_e:2 * d_e] * c)
    t_g = jnp.tanh(gates[:, 2 * d_e:3 * d_e])
    c_new = f_g * c + i_g * t_g
    o_g = jax.nn.sigmoid(gates[:, 3 * d_e:] + wc[:, 3 * d_e:] * c_new)
    h_new = o_g * jnp.tanh(c_new)
    z = jnp.maximum(h_new, 0.0) @ params["lin_w_t"] + params["lin_b"]
    z_node = z[node_ids]
    hid = jnp.maximum(z_node @ params["dec_w1_t"] + params["dec_b1"], 0.0)
    pred = hid @ params["dec_w2_t"] + params["dec_b2"]
    return pred, h_new, c_new


if __name__ == "__main__":
    key = jax.random.PRNGKey(0)
    k_feat, k_param, k_edge, k_ids, k_h, k_c = jax.random.split(key, 6)

    N = 128          # number of nodes
    NODE_DIM = 16
    EMBED_DIM = 32
    NUM_CLASSES = 8
    E = 64           # edges (no effect for K=1 ChebConv, kept for interface fidelity)
    M = 16           # nodes queried by the decoder

    node_feat = jax.random.normal(k_feat, (N, NODE_DIM), jnp.float32)
    src = jax.random.randint(k_edge, (E,), 0, N)
    dst = jax.random.randint(jax.random.fold_in(k_edge, 1), (E,), 0, N)
    edge_weight = jnp.ones((E,), jnp.float32)
    node_ids = jax.random.permutation(k_ids, N)[:M]

    # non-zero initial state so the recurrent + peephole terms are exercised
    h_init = 0.1 * jax.random.normal(k_h, (N, EMBED_DIM), jnp.float32)
    c_init = 0.1 * jax.random.normal(k_c, (N, EMBED_DIM), jnp.float32)

    params = make_params(k_param, NODE_DIM, EMBED_DIM, NUM_CLASSES)

    pred, h_0, c_0 = gclstm_model_forward(
        params, node_feat, src, dst, edge_weight, node_ids, h_init, c_init)
    jax.block_until_ready((pred, h_0, c_0))

    assert pred.shape == (M, NUM_CLASSES)
    assert h_0.shape == (N, EMBED_DIM)
    assert c_0.shape == (N, EMBED_DIM)

    # self-consistency vs plain-JAX f32 reference (loose tol: bf16 MXU operands)
    pred_r, h_r, c_r = _reference_forward(params, node_feat, node_ids, h_init, c_init)
    err = max(float(jnp.max(jnp.abs(pred - pred_r))),
              float(jnp.max(jnp.abs(h_0 - h_r))),
              float(jnp.max(jnp.abs(c_0 - c_r))))
    assert err < 7.5e-2, f"max abs diff vs reference = {err}"
    assert bool(jnp.all(jnp.isfinite(pred)))

    print("KERNEL_OK")
</pallas_src>

<mosaic_0001>
module attributes {stable_mosaic.version = 11 : i64} {
  func.func @_gclstm_fused_kernel(%arg0: i32, %arg1: memref<48x128xbf16, #tpu.memory_space<vmem>>, %arg2: memref<32x128xf32, #tpu.memory_space<vmem>>, %arg3: memref<1x128xi32, #tpu.memory_space<vmem>>, %arg4: memref<128x48xbf16, #tpu.memory_space<vmem>>, %arg5: memref<128x1xf32, #tpu.memory_space<vmem>>, %arg6: memref<128x1xf32, #tpu.memory_space<vmem>>, %arg7: memref<32x32xbf16, #tpu.memory_space<vmem>>, %arg8: memref<32x1xf32, #tpu.memory_space<vmem>>, %arg9: memref<32x32xbf16, #tpu.memory_space<vmem>>, %arg10: memref<32x1xf32, #tpu.memory_space<vmem>>, %arg11: memref<16x32xbf16, #tpu.memory_space<vmem>>, %arg12: memref<16x1xf32, #tpu.memory_space<vmem>>, %arg13: memref<96x128xf32, #tpu.memory_space<vmem>>, %arg14: memref<16x128xf32, #tpu.memory_space<vmem>>) attributes {dimension_semantics = [#tpu.dimension_semantics<arbitrary>], iteration_bounds = array<i64: 1>, scalar_prefetch = 0 : i64, scratch_operands = 0 : i64, tpu.core_type = #tpu.core_type<tc>, window_params = [{pipeline_mode = #tpu.pipeline_mode<synchronous>, transform_indices = @transform_0, window_bounds = array<i64: 48, 128>}, {pipeline_mode = #tpu.pipeline_mode<synchronous>, transform_indices = @transform_1, window_bounds = array<i64: 32, 128>}, {pipeline_mode = #tpu.pipeline_mode<synchronous>, transform_indices = @transform_2, window_bounds = array<i64: 1, 128>}, {pipeline_mode = #tpu.pipeline_mode<synchronous>, transform_indices = @transform_3, window_bounds = array<i64: 128, 48>}, {pipeline_mode = #tpu.pipeline_mode<synchronous>, transform_indices = @transform_4, window_bounds = array<i64: 128, 1>}, {pipeline_mode = #tpu.pipeline_mode<synchronous>, transform_indices = @transform_5, window_bounds = array<i64: 128, 1>}, {pipeline_mode = #tpu.pipeline_mode<synchronous>, transform_indices = @transform_6, window_bounds = array<i64: 32, 32>}, {pipeline_mode = #tpu.pipeline_mode<synchronous>, transform_indices = @transform_7, window_bounds = array<i64: 32, 1>}, {pipeline_mode = #tpu.pipeline_mode<synchronous>, transform_indices = @transform_8, window_bounds = array<i64: 32, 32>}, {pipeline_mode = #tpu.pipeline_mode<synchronous>, transform_indices = @transform_9, window_bounds = array<i64: 32, 1>}, {pipeline_mode = #tpu.pipeline_mode<synchronous>, transform_indices = @transform_10, window_bounds = array<i64: 16, 32>}, {pipeline_mode = #tpu.pipeline_mode<synchronous>, transform_indices = @transform_11, window_bounds = array<i64: 16, 1>}, {pipeline_mode = #tpu.pipeline_mode<synchronous>, transform_indices = @transform_12, window_bounds = array<i64: 96, 128>}, {pipeline_mode = #tpu.pipeline_mode<synchronous>, transform_indices = @transform_13, window_bounds = array<i64: 16, 128>}]} {
    %c0 = arith.constant 0 : index
    %c0_0 = arith.constant 0 : index
    %0 = vector.load %arg2[%c0, %c0_0] : memref<32x128xf32, #tpu.memory_space<vmem>>, vector<32x128xf32>
    %c0_1 = arith.constant 0 : index
    %c0_2 = arith.constant 0 : index
    %1 = vector.load %arg4[%c0_1, %c0_2] : memref<128x48xbf16, #tpu.memory_space<vmem>>, vector<128x48xbf16>
    %c0_3 = arith.constant 0 : index
    %c0_4 = arith.constant 0 : index
    %2 = vector.load %arg1[%c0_3, %c0_4] : memref<48x128xbf16, #tpu.memory_space<vmem>>, vector<48x128xbf16>
    %cst = arith.constant dense<0.000000e+00> : vector<128x128xf32>
    %3 = tpu.matmul %1, %2, %cst {dimension_numbers = #tpu.dot_dimension_numbers<[1], [0], [0], [1], [0, 0, 1, 1], [], []>} : vector<128x48xbf16>, vector<48x128xbf16>, vector<128x128xf32> -> vector<128x128xf32>
    %c0_5 = arith.constant 0 : index
    %c0_6 = arith.constant 0 : index
    %4 = vector.load %arg5[%c0_5, %c0_6] : memref<128x1xf32, #tpu.memory_space<vmem>>, vector<128x1xf32>
    %5 = vector.broadcast %4 : vector<128x1xf32> to vector<128x128xf32>
    %6 = arith.addf %3, %5 : vector<128x128xf32>
    %c0_7 = arith.constant 0 : index
    %c0_8 = arith.constant 0 : index
    %7 = vector.load %arg6[%c0_7, %c0_8] : memref<128x1xf32, #tpu.memory_space<vmem>>, vector<128x1xf32>
    %8 = tpu.concatenate %0, %0 in 0 : vector<32x128xf32>, vector<32x128xf32> -> vector<64x128xf32>
    %9 = vector.extract_strided_slice %6 {offsets = [0, 0], sizes = [64, 128], strides = [1, 1]} : vector<128x128xf32> to vector<64x128xf32>
    %10 = vector.extract_strided_slice %7 {offsets = [0, 0], sizes = [64, 1], strides = [1, 1]} : vector<128x1xf32> to vector<64x1xf32>
    %11 = vector.broadcast %10 : vector<64x1xf32> to vector<64x128xf32>
    %12 = arith.mulf %11, %8 : vector<64x128xf32>
    %13 = arith.addf %9, %12 : vector<64x128xf32>
    %14 = arith.negf %13 : vector<64x128xf32>
    %15 = math.exp %14 : vector<64x128xf32>
    %cst_9 = arith.constant 1.000000e+00 : f32
    %16 = vector.broadcast %cst_9 : f32 to vector<64x128xf32>
    %17 = arith.addf %16, %15 : vector<64x128xf32>
    %18 = arith.divf %16, %17 : vector<64x128xf32>
    %19 = vector.extract_strided_slice %18 {offsets = [0, 0], sizes = [32, 128], strides = [1, 1]} : vector<64x128xf32> to vector<32x128xf32>
    %20 = vector.extract_strided_slice %18 {offsets = [32, 0], sizes = [32, 128], strides = [1, 1]} : vector<64x128xf32> to vector<32x128xf32>
    %21 = vector.extract_strided_slice %6 {offsets = [64, 0], sizes = [32, 128], strides = [1, 1]} : vector<128x128xf32> to vector<32x128xf32>
    %22 = math.tanh %21 : vector<32x128xf32>
    %23 = arith.mulf %20, %0 : vector<32x128xf32>
    %24 = arith.mulf %19, %22 : vector<32x128xf32>
    %25 = arith.addf %23, %24 : vector<32x128xf32>
    %26 = vector.extract_strided_slice %6 {offsets = [96, 0], sizes = [32, 128], strides = [1, 1]} : vector<128x128xf32> to vector<32x128xf32>
    %27 = vector.extract_strided_slice %7 {offsets = [96, 0], sizes = [32, 1], strides = [1, 1]} : vector<128x1xf32> to vector<32x1xf32>
    %28 = vector.broadcast %27 : vector<32x1xf32> to vector<32x128xf32>
    %29 = arith.mulf %28, %25 : vector<32x128xf32>
    %30 = arith.addf %26, %29 : vector<32x128xf32>
    %31 = arith.negf %30 : vector<32x128xf32>
    %32 = math.exp %31 : vector<32x128xf32>
    %cst_10 = arith.constant 1.000000e+00 : f32
    %33 = vector.broadcast %cst_10 : f32 to vector<32x128xf32>
    %34 = arith.addf %33, %32 : vector<32x128xf32>
    %35 = arith.divf %33, %34 : vector<32x128xf32>
    %36 = math.tanh %25 : vector<32x128xf32>
    %37 = arith.mulf %35, %36 : vector<32x128xf32>
    %c0_11 = arith.constant 0 : index
    %c0_12 = arith.constant 0 : index
    %38 = vector.load %arg7[%c0_11, %c0_12] : memref<32x32xbf16, #tpu.memory_space<vmem>>, vector<32x32xbf16>
    %cst_13 = arith.constant 0.000000e+00 : f32
    %39 = vector.broadcast %cst_13 : f32 to vector<32x128xf32>
    %40 = arith.maximumf %37, %39 : vector<32x128xf32>
    %41 = arith.truncf %40 : vector<32x128xf32> to vector<32x128xbf16>
    %cst_14 = arith.constant dense<0.000000e+00> : vector<32x128xf32>
    %42 = tpu.matmul %38, %41, %cst_14 {dimension_numbers = #tpu.dot_dimension_numbers<[1], [0], [0], [1], [0, 0, 1, 1], [], []>} : vector<32x32xbf16>, vector<32x128xbf16>, vector<32x128xf32> -> vector<32x128xf32>
    %c0_15 = arith.constant 0 : index
    %c0_16 = arith.constant 0 : index
    %43 = vector.load %arg8[%c0_15, %c0_16] : memref<32x1xf32, #tpu.memory_space<vmem>>, vector<32x1xf32>
    %44 = vector.broadcast %43 : vector<32x1xf32> to vector<32x128xf32>
    %45 = arith.addf %42, %44 : vector<32x128xf32>
    %46 = tpu.concatenate %37, %25, %45 in 0 : vector<32x128xf32>, vector<32x128xf32>, vector<32x128xf32> -> vector<96x128xf32>
    %c0_17 = arith.constant 0 : index
    %c0_18 = arith.constant 0 : index
    %47 = vector.load %arg13[%c0_17, %c0_18] : memref<96x128xf32, #tpu.memory_space<vmem>>, vector<96x128xf32>
    tpu.vector_store %arg13[%c0_17, %c0_18], %46 {strides = array<i32>} : memref<96x128xf32, #tpu.memory_space<vmem>>, vector<96x128xf32>,
    %c0_19 = arith.constant 0 : index
    %c0_20 = arith.constant 0 : index
    %48 = vector.load %arg3[%c0_19, %c0_20] : memref<1x128xi32, #tpu.memory_space<vmem>>, vector<1x128xi32>
    %49 = tpu.iota {dimensions = array<i32: 0>} : vector<128x128xi32>
    %50 = vector.broadcast %48 : vector<1x128xi32> to vector<128x128xi32>
    %51 = arith.cmpi eq, %49, %50 : vector<128x128xi32>
    %52 = arith.extui %51 : vector<128x128xi1> to vector<128x128xi32>
    %53 = arith.sitofp %52 : vector<128x128xi32> to vector<128x128xf32>
    %54 = arith.truncf %53 : vector<128x128xf32> to vector<128x128xbf16>
    %55 = arith.truncf %45 : vector<32x128xf32> to vector<32x128xbf16>
    %cst_21 = arith.constant dense<0.000000e+00> : vector<32x128xf32>
    %56 = tpu.matmul %55, %54, %cst_21 {dimension_numbers = #tpu.dot_dimension_numbers<[1], [0], [0], [1], [0, 0, 1, 1], [], []>} : vector<32x128xbf16>, vector<128x128xbf16>, vector<32x128xf32> -> vector<32x128xf32>
    %c0_22 = arith.constant 0 : index
    %c0_23 = arith.constant 0 : index
    %57 = vector.load %arg9[%c0_22, %c0_23] : memref<32x32xbf16, #tpu.memory_space<vmem>>, vector<32x32xbf16>
    %58 = arith.truncf %56 : vector<32x128xf32> to vector<32x128xbf16>
    %cst_24 = arith.constant dense<0.000000e+00> : vector<32x128xf32>
    %59 = tpu.matmul %57, %58, %cst_24 {dimension_numbers = #tpu.dot_dimension_numbers<[1], [0], [0], [1], [0, 0, 1, 1], [], []>} : vector<32x32xbf16>, vector<32x128xbf16>, vector<32x128xf32> -> vector<32x128xf32>
    %c0_25 = arith.constant 0 : index
    %c0_26 = arith.constant 0 : index
    %60 = vector.load %arg10[%c0_25, %c0_26] : memref<32x1xf32, #tpu.memory_space<vmem>>, vector<32x1xf32>
    %61 = vector.broadcast %60 : vector<32x1xf32> to vector<32x128xf32>
    %62 = arith.addf %59, %61 : vector<32x128xf32>
    %cst_27 = arith.constant 0.000000e+00 : f32
    %63 = vector.broadcast %cst_27 : f32 to vector<32x128xf32>
    %64 = arith.maximumf %62, %63 : vector<32x128xf32>
    %c0_28 = arith.constant 0 : index
    %c0_29 = arith.constant 0 : index
    %65 = vector.load %arg11[%c0_28, %c0_29] : memref<16x32xbf16, #tpu.memory_space<vmem>>, vector<16x32xbf16>
    %66 = arith.truncf %64 : vector<32x128xf32> to vector<32x128xbf16>
    %cst_30 = arith.constant dense<0.000000e+00> : vector<16x128xf32>
    %67 = tpu.matmul %65, %66, %cst_30 {dimension_numbers = #tpu.dot_dimension_numbers<[1], [0], [0], [1], [0, 0, 1, 1], [], []>} : vector<16x32xbf16>, vector<32x128xbf16>, vector<16x128xf32> -> vector<16x128xf32>
    %c0_31 = arith.constant 0 : index
    %c0_32 = arith.constant 0 : index
    %68 = vector.load %arg12[%c0_31, %c0_32] : memref<16x1xf32, #tpu.memory_space<vmem>>, vector<16x1xf32>
    %69 = vector.broadcast %68 : vector<16x1xf32> to vector<16x128xf32>
    %70 = arith.addf %67, %69 : vector<16x128xf32>
    %c0_33 = arith.constant 0 : index
    %c0_34 = arith.constant 0 : index
    %71 = vector.load %arg14[%c0_33, %c0_34] : memref<16x128xf32, #tpu.memory_space<vmem>>, vector<16x128xf32>
    tpu.vector_store %arg14[%c0_33, %c0_34], %70 {strides = array<i32>} : memref<16x128xf32, #tpu.memory_space<vmem>>, vector<16x128xf32>,
    return
  }
  func.func @transform_0(%arg0: i32) -> (i32, i32) {
    %c0_i32 = arith.constant 0 : i32
    %c0_i32_0 = arith.constant 0 : i32
    %c0_i32_1 = arith.constant 0 : i32
    return %c0_i32, %c0_i32_0 : i32, i32
  }
  func.func @transform_1(%arg0: i32) -> (i32, i32) {
    %c0_i32 = arith.constant 0 : i32
    %c0_i32_0 = arith.constant 0 : i32
    %c0_i32_1 = arith.constant 0 : i32
    return %c0_i32, %c0_i32_0 : i32, i32
  }
  func.func @transform_2(%arg0: i32) -> (i32, i32) {
    %c0_i32 = arith.constant 0 : i32
    %c0_i32_0 = arith.constant 0 : i32
    %c0_i32_1 = arith.constant 0 : i32
    return %c0_i32, %c0_i32_0 : i32, i32
  }
  func.func @transform_3(%arg0: i32) -> (i32, i32) {
    %c0_i32 = arith.constant 0 : i32
    %c0_i32_0 = arith.constant 0 : i32
    %c0_i32_1 = arith.constant 0 : i32
    return %c0_i32, %c0_i32_0 : i32, i32
  }
  func.func @transform_4(%arg0: i32) -> (i32, i32) {
    %c0_i32 = arith.constant 0 : i32
    %c0_i32_0 = arith.constant 0 : i32
    %c0_i32_1 = arith.constant 0 : i32
    return %c0_i32, %c0_i32_0 : i32, i32
  }
  func.func @transform_5(%arg0: i32) -> (i32, i32) {
    %c0_i32 = arith.constant 0 : i32
    %c0_i32_0 = arith.constant 0 : i32
    %c0_i32_1 = arith.constant 0 : i32
    return %c0_i32, %c0_i32_0 : i32, i32
  }
  func.func @transform_6(%arg0: i32) -> (i32, i32) {
    %c0_i32 = arith.constant 0 : i32
    %c0_i32_0 = arith.constant 0 : i32
    %c0_i32_1 = arith.constant 0 : i32
    return %c0_i32, %c0_i32_0 : i32, i32
  }
  func.func @transform_7(%arg0: i32) -> (i32, i32) {
    %c0_i32 = arith.constant 0 : i32
    %c0_i32_0 = arith.constant 0 : i32
    %c0_i32_1 = arith.constant 0 : i32
    return %c0_i32, %c0_i32_0 : i32, i32
  }
  func.func @transform_8(%arg0: i32) -> (i32, i32) {
    %c0_i32 = arith.constant 0 : i32
    %c0_i32_0 = arith.constant 0 : i32
    %c0_i32_1 = arith.constant 0 : i32
    return %c0_i32, %c0_i32_0 : i32, i32
  }
  func.func @transform_9(%arg0: i32) -> (i32, i32) {
    %c0_i32 = arith.constant 0 : i32
    %c0_i32_0 = arith.constant 0 : i32
    %c0_i32_1 = arith.constant 0 : i32
    return %c0_i32, %c0_i32_0 : i32, i32
  }
  func.func @transform_10(%arg0: i32) -> (i32, i32) {
    %c0_i32 = arith.constant 0 : i32
    %c0_i32_0 = arith.constant 0 : i32
    %c0_i32_1 = arith.constant 0 : i32
    return %c0_i32, %c0_i32_0 : i32, i32
  }
  func.func @transform_11(%arg0: i32) -> (i32, i32) {
    %c0_i32 = arith.constant 0 : i32
    %c0_i32_0 = arith.constant 0 : i32
    %c0_i32_1 = arith.constant 0 : i32
    return %c0_i32, %c0_i32_0 : i32, i32
  }
  func.func @transform_12(%arg0: i32) -> (i32, i32) {
    %c0_i32 = arith.constant 0 : i32
    %c0_i32_0 = arith.constant 0 : i32
    %c0_i32_1 = arith.constant 0 : i32
    return %c0_i32, %c0_i32_0 : i32, i32
  }
  func.func @transform_13(%arg0: i32) -> (i32, i32) {
    %c0_i32 = arith.constant 0 : i32
    %c0_i32_0 = arith.constant 0 : i32
    %c0_i32_1 = arith.constant 0 : i32
    return %c0_i32, %c0_i32_0 : i32, i32
  }
}

</mosaic_0001>

<bundles_post_ra>
// kernel: tpu_custom_call.1
= control target key start
LH: loop header
LB: loop body
LE: loop exit
PB: predicated region body
PF: predicated region fallthrough
CT: control target
= control target key end

     0   :  { %19 = vsyncpa [#allocation3], 0  ;;  %v1289_v2 = vmov 0   ;;  %vm226_vm0 = vcmask 392192   ;;  %s1625_s0 = inlined_call_operand.vmem [shape: bf16[48,128], index: 0, kind: input, shape index: {}]   ;;  %s1626_s1 = inlined_call_operand.vmem [shape: f32[32,128], index: 1, kind: input, shape index: {}]   ;;  %s1627_s2 = inlined_call_operand.vmem [shape: s32[1,128], index: 2, kind: input, shape index: {}]   ;;  %s1628_s3 = inlined_call_operand.vmem [shape: bf16[128,48], index: 3, kind: input, shape index: {}]   ;;  %s1629_s4 = inlined_call_operand.vmem [shape: f32[128,1], index: 4, kind: input, shape index: {}]   ;;  %s1630_s5 = inlined_call_operand.vmem [shape: f32[128,1], index: 5, kind: input, shape index: {}]   ;;  %s1631_s6 = inlined_call_operand.vmem [shape: bf16[32,32], index: 6, kind: input, shape index: {}]   ;;  %s1632_s7 = inlined_call_operand.vmem [shape: f32[32,1], index: 7, kind: input, shape index: {}]   ;;  %s1633_s8 = inlined_call_operand.vmem [shape: bf16[32,32], index: 8, kind: input, shape index: {}]   ;;  %s1634_s9 = inlined_call_operand.vmem [shape: f32[32,1], index: 9, kind: input, shape index: {}]   ;;  %s1635_s10 = inlined_call_operand.vmem [shape: bf16[16,32], index: 10, kind: input, shape index: {}]   ;;  %s1636_s11 = inlined_call_operand.vmem [shape: f32[16,1], index: 11, kind: input, shape index: {}]   ;;  %s1637_s12 = inlined_call_operand.hbm [shape: f32[96,128], index: 12, kind: output, shape index: {0}]   ;;  %s1638_s13 = inlined_call_operand.hbm [shape: f32[16,128], index: 13, kind: output, shape index: {1}]  }
   0x1   :  { %v1161_v0 = vld [vmem:[%s1625_s0] sm:$0xff]   ;;  %v1162_v1 = vld [vmem:[%s1625_s0 + $0x8] sm:$0xff]   ;;  %1160 = vset.pattern.permute.xlu1 %v1289_v2  ;;  %1159 = vset.pattern.permute.xlu0 %v1289_v2  ;;  %v1163_v3 = vld [vmem:[%s1625_s0 + $0x10] sm:$0xff]  }
   0x2   :  { %1085 = vmatprep.subr.bf16.mxu0 %v1161_v0  ;;  %v76_v4 = vld [vmem:[%s1629_s4 + $0x20] sm:$0xff]  ;;  %v77_v7 = vld [vmem:[%s1629_s4 + $0x28] sm:$0xff]  ;;  %v1166_v12 = vld [vmem:[%s1628_s3 + $0x10] sm:$0xff]  }
   0x3   :  { %1086 = vmatpush3.bf16.msra.mxu0 %v1161_v0  ;;  %v72_v5 = vld [vmem:[%s1629_s4] sm:$0xff]  ;;  %110 = vperm.xlu1 %1160, %v76_v4   ;;  %v73_v8 = vld [vmem:[%s1629_s4 + $0x8] sm:$0xff]  ;;  %v75_v15 = vld [vmem:[%s1629_s4 + $0x18] sm:$0xff] }
   0x4   :  { %1087 = vmatprep.subr.bf16.mxu0 %v1162_v1  ;;  %v1164_v6 = vld [vmem:[%s1628_s3] sm:$0xff]   ;;  %90 = vperm.xlu0 %1159, %v72_v5   ;;  %v1165_v9 = vld [vmem:[%s1628_s3 + $0x8] sm:$0xff]   ;;  %v1167_v16 = vld [vmem:[%s1628_s3 + $0x18] sm:$0xff]  }
   0x5   :  { %1091 = vmatprep.mubr.msk.bf16.mxu0 %vm226_vm0, %v1164_v6  ;;  %v349_v10 = vld [vmem:[%s1630_s5 + $0x8] sm:$0xff]  ;;  %v348_v11 = vld [vmem:[%s1630_s5] sm:$0xff]  ;;  %v74_v17 = vld [vmem:[%s1629_s4 + $0x10] sm:$0xff] }
   0x6   :  { %v353_v13 = vld [vmem:[%s1630_s5 + $0x28] sm:$0xff]  ;;  %v352_v14 = vld [vmem:[%s1630_s5 + $0x20] sm:$0xff]  ;;  %v79_v19 = vld [vmem:[%s1629_s4 + $0x38] sm:$0xff] }
   0x7   :  { %1088 = vmatpush3.bf16.msra.mxu0 %v1162_v1  ;;  %115 = vperm.xlu1 %1160, %v77_v7   ;;  %v1168_v18 = vld [vmem:[%s1628_s3 + $0x20] sm:$0xff]   ;;  %v78_v20 = vld [vmem:[%s1629_s4 + $0x30] sm:$0xff]  ;;  %v351_v21 = vld [vmem:[%s1630_s5 + $0x18] sm:$0xff] }
   0x8   :  { %1089 = vmatprep.subr.bf16.mxu0 %v1163_v3  ;;  %95 = vperm.xlu0 %1159, %v73_v8   ;;  %v1169_v22 = vld [vmem:[%s1628_s3 + $0x28] sm:$0xff]   ;;  %v350_v23 = vld [vmem:[%s1630_s5 + $0x10] sm:$0xff] }
   0x9   :  { %v1170_v24 = vld [vmem:[%s1628_s3 + $0x30] sm:$0xff]  }
   0xb   :  { %1090 = vmatpush3.bf16.msra.mxu0 %v1163_v3  ;;  %367 = vperm.xlu1 %1160, %v349_v10  }
   0xc   :  { %362 = vperm.xlu0 %1159, %v348_v11  }
   0xe   :  { %1092 = vmatmul.mubr.msk.bf16.vlgmr.msra.gmra.mrb[0].mxu0 %vm226_vm0, %v1165_v9 }
   0xf   :  { %1095 = vmatprep.mubr.msk.bf16.mxu0 %vm226_vm0, %v1166_v12  ;;  %387 = vperm.xlu1 %1160, %v353_v13  }
  0x10   :  { %382 = vperm.xlu0 %1159, %v352_v14  }
  0x13   :  { %105 = vperm.xlu1 %1160, %v75_v15  }
  0x14   :  { %100 = vperm.xlu0 %1159, %v74_v17  }
  0x16   :  { %1096 = vmatmul.mubr.msk.bf16.gmra.mrb[4].mxu0 %vm226_vm0, %v1167_v16 }
  0x17   :  { %1099 = vmatprep.mubr.msk.bf16.mxu0 %vm226_vm0, %v1168_v18  ;;  %125 = vperm.xlu1 %1160, %v79_v19  }
  0x18   :  { %120 = vperm.xlu0 %1159, %v78_v20  }
  0x1b   :  { %377 = vperm.xlu1 %1160, %v351_v21  }
  0x1c   :  { %20 = vsyncpa [#allocation5], 0  ;;  %372 = vperm.xlu0 %1159, %v350_v23   ;;  %v355_v25 = vld [vmem:[%s1630_s5 + $0x38] sm:$0xff]  ;;  %v354_v26 = vld [vmem:[%s1630_s5 + $0x30] sm:$0xff]  ;;  %vm584_vm1 = vcmask 261120   ;;  %s1293_s0 = smov [#allocation2]  }
  0x1d   :  { %v81_v27 = vld [vmem:[%s1629_s4 + $0x48] sm:$0xff]  ;;  %v1171_v28 = vld [vmem:[%s1628_s3 + $0x38] sm:$0xff]   ;;  %v80_v29 = vld [vmem:[%s1629_s4 + $0x40] sm:$0xff]  ;;  %s952_s22 = sshll.u32 %s1293_s0, 4  ;;  %s953_s22 = int_to_ptr.vmem [resolvable:$true] %s952_s22 }
  0x1e   :  { %1100 = vmatmul.mubr.msk.bf16.gmra.mrb[8].mxu0 %vm226_vm0, %v1169_v22  ;;  %v83_v30 = vld [vmem:[%s1629_s4 + $0x58] sm:$0xff]  ;;  %v82_v31 = vld [vmem:[%s1629_s4 + $0x50] sm:$0xff]  ;;  %v85_v32 = vld [vmem:[%s1629_s4 + $0x68] sm:$0xff]  ;;  %s1241_s23 = scalar_lea.vmem %s953_s22, 1536  ;;  %p1246_p1 = scmp.lt.s32.totalorder %s953_s22, %s953_s22 }
  0x1f   :  { %1103 = vmatprep.mubr.msk.bf16.mxu0 %vm226_vm0, %v1170_v24  ;;  %397 = vperm.xlu1 %1160, %v355_v25   ;;  %v84_v33 = vld [vmem:[%s1629_s4 + $0x60] sm:$0xff]  ;;  %v357_v34 = vld [vmem:[%s1630_s5 + $0x68] sm:$0xff]  ;;  %v87_v36 = vld [vmem:[%s1629_s4 + $0x78] sm:$0xff]  ;;  %p1242_p0 = scmp.ne.s32.totalorder %s953_s22, %s1241_s23  ;;  %p1247_p2 = scmp.lt.s32.totalorder %s1241_s23, %s1241_s23 }
  0x20   :  { %392 = vperm.xlu0 %1159, %v354_v26   ;;  %v356_v35 = vld [vmem:[%s1630_s5 + $0x60] sm:$0xff]  ;;  %v86_v37 = vld [vmem:[%s1629_s4 + $0x70] sm:$0xff]  ;;  %v359_v38 = vld [vmem:[%s1630_s5 + $0x78] sm:$0xff] }
  0x21   :  { %v358_v39 = vld [vmem:[%s1630_s5 + $0x70] sm:$0xff]  ;;  %v551_v40 = vld [vmem:[%s1632_s7 + $0x8] sm:$0xff]  ;;  %v550_v41 = vld [vmem:[%s1632_s7] sm:$0xff]  ;;  %p1248_p3 = por %p1247_p2, %p1246_p1 }
  0x22   :  { %v553_v42 = vld [vmem:[%s1632_s7 + $0x18] sm:$0xff]  ;;  %v552_v43 = vld [vmem:[%s1632_s7 + $0x10] sm:$0xff]  ;;  %v788_v44 = vld [vmem:[%s1634_s9 + $0x8] sm:$0xff] }
  0x23   :  { %135 = vperm.xlu1 %1160, %v81_v27   ;;  %v787_v45 = vld [vmem:[%s1634_s9] sm:$0xff]  ;;  %v790_v46 = vld [vmem:[%s1634_s9 + $0x18] sm:$0xff]  ;;  %v789_v47 = vld [vmem:[%s1634_s9 + $0x10] sm:$0xff]  ;;  %p1249_p4 = pnand %p1248_p3, %p1242_p0 }
  0x24   :  { %130 = vperm.xlu0 %1159, %v80_v29   ;;  %v885_v48 = vld [vmem:[%s1636_s11 + $0x8] sm:$0xff]  ;;  %v884_v49 = vld [vmem:[%s1636_s11] sm:$0xff]  ;;  %v1529_v0 = vld [vmem:[%s1626_s1 + $0x10] sm:$0xff] }
  0x25   :  { %v1172_v50 = vld [vmem:[%s1631_s6] sm:$0xff]   ;;  %v1539_v2 = vld [vmem:[%s1626_s1 + $0x18] sm:$0xff]  ;;  %v1544_v4 = vld [vmem:[%s1626_s1 + $0x8] sm:$0xff] }
  0x26   :  { %1104 = vmatmul.mubr.msk.bf16.gmra.mrb[12].mxu0 %vm226_vm0, %v1171_v28  ;;  %1111 = vmatprep.mubr.msk.bf16.mxu1 %vm584_vm1, %v1172_v50  ;;  %v1534_v1 = vld [vmem:[%s1626_s1] sm:$0xff] }
  0x27   :  { %145 = vperm.xlu1 %1160, %v83_v30  }
  0x28   :  { %140 = vperm.xlu0 %1159, %v82_v31  }
  0x2b   :  { %155 = vperm.xlu1 %1160, %v85_v32  }
  0x2c   :  { %150 = vperm.xlu0 %1159, %v84_v33  }
  0x2f   :  { %487 = vperm.xlu1 %1160, %v357_v34  }
  0x30   :  { %482 = vperm.xlu0 %1159, %v356_v35  }
  0x33   :  { %165 = vperm.xlu1 %1160, %v87_v36  }
  0x34   :  { %160 = vperm.xlu0 %1159, %v86_v37  }
  0x37   :  { %497 = vperm.xlu1 %1160, %v359_v38  }
  0x38   :  { %492 = vperm.xlu0 %1159, %v358_v39  }
  0x3b   :  { %561 = vperm.xlu1 %1160, %v551_v40  }
  0x3c   :  { %556 = vperm.xlu0 %1159, %v550_v41  }
  0x3f   :  { %571 = vperm.xlu1 %1160, %v553_v42  }
  0x40   :  { %566 = vperm.xlu0 %1159, %v552_v43  }
  0x43   :  { %798 = vperm.xlu1 %1160, %v788_v44  }
  0x44   :  { %793 = vperm.xlu0 %1159, %v787_v45  }
  0x47   :  { %808 = vperm.xlu1 %1160, %v790_v46  }
  0x48   :  { %803 = vperm.xlu0 %1159, %v789_v47  }
  0x4b   :  { %893 = vperm.xlu1 %1160, %v885_v48  }
  0x4c   :  { %888 = vperm.xlu0 %1159, %v884_v49  }
  0x82   :  { %v111_v52 = vpop.permute.xlu1 %110 }
  0x83   :  { %v91_v51 = vpop.permute.xlu0 %90 }
  0x86   :  { %v116_v54 = vpop.permute.xlu1 %115 }
  0x87   :  { %v96_v53 = vpop.permute.xlu0 %95 }
  0x8a   :  { %v368_v56 = vpop.permute.xlu1 %367 }
  0x8b   :  { %v363_v55 = vpop.permute.xlu0 %362  ;;  %v401_v16 = vmul.f32 %v368_v56, %v1544_v4 }
  0x8c   :  { %v400_v8 = vmul.f32 %v363_v55, %v1534_v1 }
  0x8e   :  { %v388_v58 = vpop.permute.xlu1 %387 }
  0x8f   :  { %v383_v57 = vpop.permute.xlu0 %382  ;;  %v405_v39 = vmul.f32 %v388_v58, %v1544_v4 }
  0x90   :  { %v404_v31 = vmul.f32 %v383_v57, %v1534_v1 }
  0x92   :  { %v106_v60 = vpop.permute.xlu1 %105 }
  0x93   :  { %v101_v59 = vpop.permute.xlu0 %100 }
  0x96   :  { %v126_v62 = vpop.permute.xlu1 %125 }
  0x97   :  { %v121_v61 = vpop.permute.xlu0 %120 }
  0x9a   :  { %v378_v9 = vpop.permute.xlu1 %377 }
  0x9b   :  { %v373_v63 = vpop.permute.xlu0 %372  ;;  %v403_v12 = vmul.f32 %v378_v9, %v1539_v2 }
  0x9c   :  { %v402_v5 = vmul.f32 %v373_v63, %v1529_v0 }
  0x9e   :  { %v398_v25 = vpop.permute.xlu1 %397 }
  0x9f   :  { %v393_v17 = vpop.permute.xlu0 %392  ;;  %v407_v35 = vmul.f32 %v398_v25, %v1539_v2 }
  0xa0   :  { %v406_v28 = vmul.f32 %v393_v17, %v1529_v0 }
  0xa2   :  { %v136_v44 = vpop.permute.xlu1 %135 }
  0xa3   :  { %v131_v32 = vpop.permute.xlu0 %130 }
  0xa7   :  { %v141_v48 = vpop.permute.xlu0 %140 }
  0xe1   :  { %v1093_v3 = vpop.f32.mrb[0].mxu0 }
  0xe2   :  { %v294_v6 = vadd.f32 %v1093_v3, %v101_v59  ;;  %v285_v7 = vpop.f32.mrb[1].mxu0 }
  0xe3   :  { %v286_v10 = vadd.f32 %v285_v7, %v91_v51  ;;  %v1094_v11 = vpop.f32.mrb[2].mxu0  ;;  %v151_v7 = vpop.permute.xlu0 %150 }
  0xe4   :  { %v410_v13 = vadd.f32 %v402_v5, %v294_v6  ;;  %v297_v14 = vadd.f32 %v1094_v11, %v106_v60  ;;  %v288_v15 = vpop.f32.mrb[3].mxu0 }
  0xe5   :  { %v408_v18 = vadd.f32 %v400_v8, %v286_v10  ;;  %v289_v19 = vadd.f32 %v288_v15, %v96_v53 }
  0xe6   :  { %v1000_v20 = vmul.f32 -1.442695, %v410_v13  ;;  %v411_v21 = vadd.f32 %v403_v12, %v297_v14 }
  0xe7   :  { %v998_v22 = vmul.f32 -1.442695, %v408_v18  ;;  %v409_v23 = vadd.f32 %v401_v16, %v289_v19 }
  0xe8   :  { %1177 = vpow2.f32 %v1000_v20  ;;  %v1001_v24 = vmul.f32 -1.442695, %v411_v21 }
  0xe9   :  { %1179 = vpow2.f32 %v998_v22  ;;  %v999_v26 = vmul.f32 -1.442695, %v409_v23  ;;  %v1097_v27 = vpop.f32.mrb[4].mxu0  ;;  %v483_v23 = vpop.permute.xlu0 %482 }
  0xea   :  { %1181 = vpow2.f32 %v1001_v24  ;;  %v310_v29 = vadd.f32 %v1097_v27, %v121_v61  ;;  %v301_v30 = vpop.f32.mrb[5].mxu0  ;;  %v146_v61 = vpop.permute.xlu1 %145 }
  0xeb   :  { %1183 = vpow2.f32 %v999_v26  ;;  %v302_v33 = vadd.f32 %v301_v30, %v111_v52  ;;  %v1098_v34 = vpop.f32.mrb[6].mxu0 }
  0xec   :  { %v414_v36 = vadd.f32 %v406_v28, %v310_v29  ;;  %v313_v37 = vadd.f32 %v1098_v34, %v126_v62  ;;  %v304_v38 = vpop.f32.mrb[7].mxu0 }
  0xed   :  { %v412_v40 = vadd.f32 %v404_v31, %v302_v33  ;;  %v305_v41 = vadd.f32 %v304_v38, %v116_v54  ;;  %v161_v33 = vpop.permute.xlu0 %160 }
  0xee   :  { %v1004_v42 = vmul.f32 -1.442695, %v414_v36  ;;  %v415_v43 = vadd.f32 %v407_v35, %v313_v37  ;;  %v156_v12 = vpop.permute.xlu1 %155 }
  0xef   :  { %v1002_v45 = vmul.f32 -1.442695, %v412_v40  ;;  %v413_v46 = vadd.f32 %v405_v39, %v305_v41 }
  0xf0   :  { %1185 = vpow2.f32 %v1004_v42  ;;  %v1005_v47 = vmul.f32 -1.442695, %v415_v43 }
  0xf1   :  { %1187 = vpow2.f32 %v1002_v45  ;;  %v1003_v49 = vmul.f32 -1.442695, %v413_v46  ;;  %v1101_v50 = vpop.f32.mrb[8].mxu0  ;;  %v493_v45 = vpop.permute.xlu0 %492 }
  0xf2   :  { %v1178_v51 = vpop.eup %1177  ;;  %1189 = vpow2.f32 %v1005_v47  ;;  %v326_v52 = vadd.f32 %v1101_v50, %v141_v48  ;;  %v317_v53 = vpop.f32.mrb[9].mxu0 }
  0xf3   :  { %v1180_v55 = vpop.eup %1179  ;;  %v442_v56 = vadd.f32 1.0, %v1178_v51  ;;  %1191 = vpow2.f32 %v1003_v49  ;;  %v1102_v57 = vpop.f32.mrb[10].mxu0  ;;  %v318_v63 = vadd.f32 %v317_v53, %v131_v32 }
  0xf4   :  { %v1182_v54 = vpop.eup %1181  ;;  %v440_v58 = vadd.f32 1.0, %v1180_v55  ;;  %1193 = vtanh.f32 %v326_v52  ;;  %v320_v59 = vpop.f32.mrb[11].mxu0  ;;  %v329_v5 = vadd.f32 %v1102_v57, %v146_v61 }
  0xf5   :  { %v1184_v60 = vpop.eup %1183  ;;  %1195 = vrcp.f32 %v442_v56  ;;  %v443_v62 = vadd.f32 1.0, %v1182_v54  ;;  %v321_v6 = vadd.f32 %v320_v59, %v136_v44  ;;  %v488_v27 = vpop.permute.xlu1 %487 }
  0xf6   :  { %1197 = vrcp.f32 %v440_v58  ;;  %v441_v3 = vadd.f32 1.0, %v1184_v60 }
  0xf7   :  { %1199 = vrcp.f32 %v443_v62 }
  0xf8   :  { %1201 = vrcp.f32 %v441_v3 }
  0xf9   :  { %1203 = vtanh.f32 %v318_v63  ;;  %v1105_v8 = vpop.f32.mrb[12].mxu0  ;;  %v166_v37 = vpop.permute.xlu1 %165 }
  0xfa   :  { %v1186_v9 = vpop.eup %1185  ;;  %1205 = vtanh.f32 %v329_v5  ;;  %v333_v10 = vpop.f32.mrb[13].mxu0  ;;  %v342_v48 = vadd.f32 %v1105_v8, %v161_v33 }
  0xfb   :  { %v1188_v11 = vpop.eup %1187  ;;  %v446_v13 = vadd.f32 1.0, %v1186_v9  ;;  %1207 = vtanh.f32 %v321_v6  ;;  %v1106_v14 = vpop.f32.mrb[14].mxu0  ;;  %v334_v52 = vadd.f32 %v333_v10, %v151_v7 }
  0xfc   :  { %v1190_v15 = vpop.eup %1189  ;;  %v444_v16 = vadd.f32 1.0, %v1188_v11  ;;  %v336_v17 = vpop.f32.mrb[15].mxu0  ;;  %v345_v56 = vadd.f32 %v1106_v14, %v166_v37  ;;  %v653_v14 = vlaneseq }
  0xfd   :  { %v1192_v18 = vpop.eup %1191  ;;  %1209 = vrcp.f32 %v446_v13  ;;  %v447_v19 = vadd.f32 1.0, %v1190_v15  ;;  %v498_v51 = vpop.permute.xlu1 %497  ;;  %v337_v54 = vadd.f32 %v336_v17, %v156_v12 }
  0xfe   :  { %v1194_v20 = vpop.eup %1193  ;;  %1211 = vrcp.f32 %v444_v16  ;;  %v445_v21 = vadd.f32 1.0, %v1192_v18 }
  0xff   :  { %v1196_v22 = vpop.eup %1195  ;;  %1213 = vrcp.f32 %v447_v19 }
 0x100   :  { %v1198_v24 = vpop.eup %1197  ;;  %1215 = vrcp.f32 %v445_v21  ;;  %v474_v25 = vmul.f32 %v1196_v22, %v1194_v20  ;;  %v1558_v21 = vshrl.u32 %v653_v14, 7 }
 0x101   :  { %v1200_v26 = vpop.eup %1199 }
 0x102   :  { %v1202_v28 = vpop.eup %1201  ;;  %v656_v33 = vadd.s32 16, %v1558_v21  ;;  %v659_v37 = vadd.s32 40, %v1558_v21 }
 0x103   :  { %v1204_v29 = vpop.eup %1203 }
 0x104   :  { %v1206_v30 = vpop.eup %1205  ;;  %v472_v31 = vmul.f32 %v1204_v29, %v1198_v24  ;;  %v655_v29 = vadd.s32 8, %v1558_v21 }
 0x105   :  { %v1208_v32 = vpop.eup %1207  ;;  %v475_v34 = vmul.f32 %v1206_v30, %v1200_v26 }
 0x106   :  { %v473_v35 = vmul.f32 %v1208_v32, %v1202_v28 }
 0x107   :  { %v1210_v36 = vpop.eup %1209 }
 0x108   :  { %v1212_v38 = vpop.eup %1211  ;;  %v470_v39 = vmul.f32 %v1210_v36, %v1529_v0  ;;  %v658_v36 = vadd.s32 32, %v1558_v21 }
 0x109   :  { %v1214_v40 = vpop.eup %1213  ;;  %v468_v41 = vmul.f32 %v1212_v38, %v1534_v1  ;;  %v1290_v38 = vmov 1.0|1.0  }
 0x10a   :  { %v1216_v42 = vpop.eup %1215  ;;  %v478_v43 = vadd.f32 %v474_v25, %v470_v39  ;;  %v471_v44 = vmul.f32 %v1214_v40, %v1539_v2  ;;  %v660_v39 = vadd.s32 48, %v1558_v21  ;;  %v661_v40 = vadd.s32 56, %v1558_v21 }
 0x10b   :  { %v476_v46 = vadd.f32 %v472_v31, %v468_v41  ;;  %v469_v47 = vmul.f32 %v1216_v42, %v1544_v4  ;;  %v1014_v31 = vld [vmem:[%s1627_s2] ss:$0 sm:$0xff]  ;;  %v662_v41 = vadd.s32 64, %v1558_v21  ;;  %v663_v42 = vadd.s32 72, %v1558_v21 }
 0x10c   :  { %v502_v49 = vmul.f32 %v493_v45, %v478_v43  ;;  %646 = vst [vmem:[#allocation2 + $0x30] sm:$0xff] %v478_v43  ;;  %v479_v50 = vadd.f32 %v475_v34, %v471_v44  ;;  %vm674_vm2 = vcmp.eq.s32.totalorder %v1558_v21, %v1014_v31  ;;  %vm675_vm3 = vcmp.eq.s32.totalorder %v655_v29, %v1014_v31 }
 0x10d   :  { %v500_v53 = vmul.f32 %v483_v23, %v476_v46  ;;  %644 = vst [vmem:[#allocation2 + $0x20] sm:$0xff] %v476_v46  ;;  %v477_v0 = vadd.f32 %v473_v35, %v469_v47  ;;  %v657_v34 = vadd.s32 24, %v1558_v21  ;;  %vm1031_vm4 = vmpackc.low %vm675_vm3, %vm674_vm2  ;;  %v1173_v35 = vld [vmem:[%s1631_s6 + $0x8] sm:$0xff]   ;;  %vm676_vm5 = vcmp.eq.s32.totalorder %v656_v33, %v1014_v31 }
 0x10e   :  { %v506_v55 = vadd.f32 %v502_v49, %v342_v48  ;;  %v503_v1 = vmul.f32 %v498_v51, %v479_v50  ;;  %647 = vst [vmem:[#allocation2 + $0x38] sm:$0xff] %v479_v50  ;;  %vm678_vm8 = vcmp.eq.s32.totalorder %v658_v36, %v1014_v31  ;;  %vm679_vm9 = vcmp.eq.s32.totalorder %v659_v37, %v1014_v31  ;;  %v557_v49 = vpop.permute.xlu0 %556 }
 0x10f   :  { %v504_v57 = vadd.f32 %v500_v53, %v334_v52  ;;  %v501_v2 = vmul.f32 %v488_v27, %v477_v0  ;;  %645 = vst [vmem:[#allocation2 + $0x28] sm:$0xff] %v477_v0  ;;  %vm677_vm6 = vcmp.eq.s32.totalorder %v657_v34, %v1014_v31  ;;  %vm1035_vm10 = vmpackc.low %vm679_vm9, %vm678_vm8  ;;  %vm680_vm11 = vcmp.eq.s32.totalorder %v660_v39, %v1014_v31 }
 0x110   :  { %v1008_v58 = vmul.f32 -1.442695, %v506_v55  ;;  %v507_v59 = vadd.f32 %v503_v1, %v345_v56  ;;  %vm1033_vm7 = vmpackc.low %vm677_vm6, %vm676_vm5  ;;  %vm681_vm12 = vcmp.eq.s32.totalorder %v661_v40, %v1014_v31  ;;  %vm682_vm14 = vcmp.eq.s32.totalorder %v662_v41, %v1014_v31 }
 0x111   :  { %v1006_v4 = vmul.f32 -1.442695, %v504_v57  ;;  %v505_v60 = vadd.f32 %v501_v2, %v337_v54  ;;  %vm1037_vm13 = vmpackc.low %vm681_vm12, %vm680_vm11  ;;  %vm683_vm15 = vcmp.eq.s32.totalorder %v663_v42, %v1014_v31  ;;  %v665_v44 = vadd.s32 88, %v1558_v21 }
 0x112   :  { %1217 = vpow2.f32 %v1008_v58  ;;  %v1009_v61 = vmul.f32 -1.442695, %v507_v59  ;;  %vm1039_vm0 = vmpackc.low %vm683_vm15, %vm682_vm14  ;;  %v666_v45 = vadd.s32 96, %v1558_v21  ;;  %v668_v47 = vadd.s32 112, %v1558_v21  ;;  %v567_v51 = vpop.permute.xlu0 %566 }
 0x113   :  { %1219 = vpow2.f32 %v1006_v4  ;;  %v1007_v62 = vmul.f32 -1.442695, %v505_v60  ;;  %vm685_vm3 = vcmp.eq.s32.totalorder %v665_v44, %v1014_v31  ;;  %v669_v48 = vadd.s32 120, %v1558_v21  ;;  %v1174_v4 = vld [vmem:[%s1633_s8] sm:$0xff]  }
 0x114   :  { %1221 = vpow2.f32 %v1009_v61  ;;  %vm686_vm5 = vcmp.eq.s32.totalorder %v666_v45, %v1014_v31  ;;  %vm688_vm8 = vcmp.eq.s32.totalorder %v668_v47, %v1014_v31  ;;  %1139 = vmatprep.mubr.msk.bf16.mxu0 %vm584_vm1, %v1174_v4  ;;  %vm1292_vm11 = vmmov 0  }
 0x115   :  { %1223 = vpow2.f32 %v1007_v62  ;;  %vm689_vm9 = vcmp.eq.s32.totalorder %v669_v48, %v1014_v31 }
 0x116   :  { %1225 = vtanh.f32 %v478_v43  ;;  %v664_v43 = vadd.s32 80, %v1558_v21 }
 0x117   :  { %1227 = vtanh.f32 %v476_v46  ;;  %v667_v46 = vadd.s32 104, %v1558_v21 }
 0x118   :  { %1229 = vtanh.f32 %v479_v50  ;;  %vm684_vm2 = vcmp.eq.s32.totalorder %v664_v43, %v1014_v31  ;;  %v562_v50 = vpop.permute.xlu1 %561 }
 0x119   :  { %1231 = vtanh.f32 %v477_v0  ;;  %vm687_vm6 = vcmp.eq.s32.totalorder %v667_v46, %v1014_v31 }
 0x11c   :  { %v1218_v63 = vpop.eup %1217  ;;  %v572_v55 = vpop.permute.xlu1 %571 }
 0x11d   :  { %v1220_v3 = vpop.eup %1219  ;;  %v522_v5 = vadd.f32 1.0, %v1218_v63 }
 0x11e   :  { %v1222_v6 = vpop.eup %1221  ;;  %v520_v7 = vadd.f32 1.0, %v1220_v3 }
 0x11f   :  { %v1224_v8 = vpop.eup %1223  ;;  %1233 = vrcp.f32 %v522_v5  ;;  %v523_v9 = vadd.f32 1.0, %v1222_v6  ;;  %v1175_v6 = vld [vmem:[%s1633_s8 + $0x8] sm:$0xff]  }
 0x120   :  { %1235 = vrcp.f32 %v520_v7  ;;  %v521_v10 = vadd.f32 1.0, %v1224_v8  ;;  %v1226_v11 = vpop.eup %1225  ;;  %v1291_v7 = vmov 0.0   ;;  %v794_v8 = vpop.permute.xlu0 %793 }
 0x121   :  { %1237 = vrcp.f32 %v523_v9  ;;  %v1228_v12 = vpop.eup %1227  ;;  %v799_v9 = vpop.permute.xlu1 %798 }
 0x122   :  { %1239 = vrcp.f32 %v521_v10  ;;  %v1230_v13 = vpop.eup %1229 }
 0x123   :  { %v1232_v15 = vpop.eup %1231 }
 0x124   :  { %v804_v10 = vpop.permute.xlu0 %803 }
 0x125   :  { %v809_v14 = vpop.permute.xlu1 %808 }
 0x129   :  { %v1234_v16 = vpop.eup %1233 }
 0x12a   :  { %v1236_v17 = vpop.eup %1235  ;;  %v538_v18 = vmul.f32 %v1234_v16, %v1226_v11 }
 0x12b   :  { %v1238_v19 = vpop.eup %1237  ;;  %v536_v20 = vmul.f32 %v1236_v17, %v1228_v12 }
 0x12c   :  { %v1240_v22 = vpop.eup %1239  ;;  %v539_v23 = vmul.f32 %v1238_v19, %v1230_v13  ;;  %642 = vst [vmem:[#allocation2 + $0x10] sm:$0xff] %v538_v18  ;;  %v546_v25 = vmax.f32 %v538_v18, 0.0 }
 0x12d   :  { %v537_v24 = vmul.f32 %v1240_v22, %v1232_v15  ;;  %640 = vst [vmem:[#allocation2] sm:$0xff] %v536_v20  ;;  %v544_v27 = vmax.f32 %v536_v20, 0.0 }
 0x12e   :  { %v547_v26 = vmax.f32 %v539_v23, 0.0  ;;  %643 = vst [vmem:[#allocation2 + $0x18] sm:$0xff] %v539_v23 }
 0x12f   :  { %v545_v28 = vmax.f32 %v537_v24, 0.0  ;;  %641 = vst [vmem:[#allocation2 + $0x8] sm:$0xff] %v537_v24 }
 0x130   :  { %v549_v30 = vpack.c.bf16 %v547_v26, %v546_v25  ;;  %v1176_v26 = vld [vmem:[%s1635_s10] sm:$0xff]  }
 0x131   :  { %v548_v32 = vpack.c.bf16 %v545_v28, %v544_v27 }
 0x133   :  { %1107 = vmatprep.subr.bf16.mxu1 %v548_v32 }
 0x134   :  { %1108 = vmatpush3.bf16.msra.mxu1 %v548_v32 }
 0x135   :  { %1109 = vmatprep.subr.bf16.mxu1 %v549_v30 }
 0x138   :  { %1110 = vmatpush3.bf16.msra.mxu1 %v549_v30 }
 0x139   :  { %1115 = vmatprep.subr.msk.bf16.mxu1 %vm1031_vm4, %v1290_v38 }
 0x13b   :  { %1112 = vmatmul.mubr.msk.bf16.vlgmr.msra.gmra.mrb[0].mxu1 %vm584_vm1, %v1173_v35 }
 0x13c   :  { %1116 = vmatpush3.bf16.msk.msra.mxu1 %vm1031_vm4, %v1290_v38  ;;  %vm1041_vm4 = vmpackc.low %vm685_vm3, %vm684_vm2 }
 0x13d   :  { %1117 = vmatprep.subr.msk.bf16.mxu1 %vm1033_vm7, %v1290_v38 }
 0x140   :  { %1118 = vmatpush3.bf16.msk.msra.mxu1 %vm1033_vm7, %v1290_v38  ;;  %vm1043_vm7 = vmpackc.low %vm687_vm6, %vm686_vm5 }
 0x141   :  { %1119 = vmatprep.subr.msk.bf16.mxu1 %vm1035_vm10, %v1290_v38 }
 0x144   :  { %1120 = vmatpush3.bf16.msk.msra.mxu1 %vm1035_vm10, %v1290_v38  ;;  %vm1045_vm10 = vmpackc.low %vm689_vm9, %vm688_vm8 }
 0x145   :  { %1121 = vmatprep.subr.msk.bf16.mxu1 %vm1037_vm13, %v1290_v38 }
 0x148   :  { %1122 = vmatpush3.bf16.msk.msra.mxu1 %vm1037_vm13, %v1290_v38 }
 0x149   :  { %1123 = vmatprep.subr.msk.bf16.mxu1 %vm1039_vm0, %v1290_v38 }
 0x14c   :  { %1124 = vmatpush3.bf16.msk.msra.mxu1 %vm1039_vm0, %v1290_v38 }
 0x14d   :  { %1125 = vmatprep.subr.msk.bf16.mxu1 %vm1041_vm4, %v1290_v38 }
 0x150   :  { %1126 = vmatpush3.bf16.msk.msra.mxu1 %vm1041_vm4, %v1290_v38 }
 0x151   :  { %1127 = vmatprep.subr.msk.bf16.mxu1 %vm1043_vm7, %v1290_v38 }
 0x154   :  { %1128 = vmatpush3.bf16.msk.msra.mxu1 %vm1043_vm7, %v1290_v38 }
 0x155   :  { %1129 = vmatprep.subr.msk.bf16.mxu1 %vm1045_vm10, %v1290_v38 }
 0x158   :  { %1130 = vmatpush3.bf16.msk.msra.mxu1 %vm1045_vm10, %v1290_v38 }
 0x159   :  { %1143 = vmatprep.subr.bf16.mxu1 %v1291_v7 }
 0x20e   :  { %v1113_v52 = vpop.f32.mrb[0].mxu1 }
 0x20f   :  { %v634_v53 = vadd.f32 %v1113_v52, %v567_v51  ;;  %v625_v0 = vpop.f32.mrb[1].mxu1 }
 0x210   :  { %v626_v56 = vadd.f32 %v625_v0, %v557_v49  ;;  %v1114_v1 = vpop.f32.mrb[2].mxu1 }
 0x211   :  { %650 = vst [vmem:[#allocation2 + $0x50] sm:$0xff] %v634_v53  ;;  %v637_v57 = vadd.f32 %v1114_v1, %v572_v55  ;;  %v628_v54 = vpop.f32.mrb[3].mxu1 }
 0x212   :  { %648 = vst [vmem:[#allocation2 + $0x40] sm:$0xff] %v626_v56  ;;  %v629_v2 = vadd.f32 %v628_v54, %v562_v50 }
 0x213   :  { %651 = vst [vmem:[#allocation2 + $0x58] sm:$0xff] %v637_v57  ;;  %v731_v58 = vpack.c.bf16 %v637_v57, %v634_v53 }
 0x214   :  { %649 = vst [vmem:[#allocation2 + $0x48] sm:$0xff] %v629_v2  ;;  %v730_v59 = vpack.c.bf16 %v629_v2, %v626_v56 }
 0x216   :  { %1131 = vmatprep.mubr.bf16.mxu1 %v730_v59 }
 0x217   :  { %1132 = vmatmul.mubr.bf16.vlgmr.msra.gmra.mrb[4].mxu1 %v731_v58 }
 0x218   :  { %1147 = vmatprep.mubr.msk.bf16.mxu1 %vm1292_vm11, %v1291_v7 }
 0x2ea   :  { %v1133_v60 = vpop.f32.mrb[4].mxu1 }
 0x2eb   :  { %v766_v61 = vpop.f32.mrb[5].mxu1 }
 0x2ec   :  { %v1134_v62 = vpop.f32.mrb[6].mxu1 }
 0x2ed   :  { %v786_v63 = vpack.c.bf16 %v1134_v62, %v1133_v60  ;;  %v769_v3 = vpop.f32.mrb[7].mxu1 }
 0x2ee   :  { %v785_v5 = vpack.c.bf16 %v769_v3, %v766_v61 }
 0x2f0   :  { %1135 = vmatprep.subr.bf16.mxu0 %v785_v5 }
 0x2f1   :  { %1136 = vmatpush3.bf16.msra.mxu0 %v785_v5 }
 0x2f2   :  { %1137 = vmatprep.subr.bf16.mxu0 %v786_v63 }
 0x2f5   :  { %1138 = vmatpush3.bf16.msra.mxu0 %v786_v63 }
 0x2f8   :  { %1140 = vmatmul.mubr.msk.bf16.vlgmr.msra.gmra.mrb[16].mxu0 %vm584_vm1, %v1175_v6 }
 0x3cb   :  { %v1141_v11 = vpop.f32.mrb[16].mxu0 }
 0x3cc   :  { %v870_v12 = vadd.f32 %v1141_v11, %v804_v10  ;;  %v861_v13 = vpop.f32.mrb[17].mxu0 }
 0x3cd   :  { %v862_v15 = vadd.f32 %v861_v13, %v794_v8  ;;  %v1142_v16 = vpop.f32.mrb[18].mxu0 }
 0x3ce   :  { %v873_v17 = vadd.f32 %v1142_v16, %v809_v14  ;;  %v864_v18 = vpop.f32.mrb[19].mxu0  ;;  %v878_v20 = vmax.f32 %v870_v12, 0.0 }
 0x3cf   :  { %v865_v19 = vadd.f32 %v864_v18, %v799_v9  ;;  %v876_v22 = vmax.f32 %v862_v15, 0.0 }
 0x3d0   :  { %v879_v21 = vmax.f32 %v873_v17, 0.0 }
 0x3d1   :  { %v877_v23 = vmax.f32 %v865_v19, 0.0 }
 0x3d2   :  { %v883_v24 = vpack.c.bf16 %v879_v21, %v878_v20 }
 0x3d3   :  { %v882_v25 = vpack.c.bf16 %v877_v23, %v876_v22 }
 0x3d5   :  { %1144 = vmatpush3.bf16.msra.mxu1 %v882_v25 }
 0x3d6   :  { %1145 = vmatprep.subr.bf16.mxu1 %v1291_v7 }
 0x3d9   :  { %1146 = vmatpush3.bf16.msra.mxu1 %v883_v24 }
 0x3dc   :  { %1148 = vmatmul.mubr.msk.bf16.vlgmr.msra.gmra.mrb[8].mxu1 %vm584_vm1, %v1176_v26 }
 0x3dd   :  { %1252 = shalt.err (!%p1249_p4)
}
 0x3de   :  { %s1253_s25 = scalar_lea.hbm %s1637_s12, 1536 }
 0x3df   :  { %p1254_p5 = scmp.ne.s32.totalorder %s1637_s12, %s1253_s25  ;;  %p1257_p6 = scmp.lt.u32.totalorder %s1253_s25, %s1637_s12 }
 0x3e1   :  { %p1259_p7 = pnand %p1257_p6, %p1254_p5 }
 0x3e3   :  { %1262 = shalt.err (!%p1259_p7)
}
 0x3e4   :  { %s1294_s29 = smov 128   ;;  %s1295_s9 = smov 8   ;;  %v889_v27 = vpop.permute.xlu0 %888  ;;  %v894_v31 = vpop.permute.xlu1 %893 }
 0x3e5   :  { %958 = dma.vmem_to_hbm [thread:$0]  %s953_s22, 1536, %s1637_s12, [#allocation3], %s1294_s29, %s1294_s29, %s1295_s9  }
 0x3e6   :  { %s1296_s14 = smov [#allocation4]  }
 0x3e7   :  { %s964_s15 = sshll.u32 %s1296_s14, 4  ;;  %s965_s15 = int_to_ptr.vmem [resolvable:$true] %s964_s15 }
 0x3e8   :  { %s1263_s16 = scalar_lea.vmem %s965_s15, 256  ;;  %p1268_p9 = scmp.lt.s32.totalorder %s965_s15, %s965_s15 }
 0x3e9   :  { %p1264_p8 = scmp.ne.s32.totalorder %s965_s15, %s1263_s16  ;;  %p1269_p10 = scmp.lt.s32.totalorder %s1263_s16, %s1263_s16 }
 0x3eb   :  { %p1270_p11 = por %p1269_p10, %p1268_p9 }
 0x3ed   :  { %p1271_p12 = pnand %p1270_p11, %p1264_p8 }
 0x4af   :  { %v938_v28 = vpop.f32.mrb[8].mxu1 }
 0x4b0   :  { %v939_v29 = vadd.f32 %v938_v28, %v889_v27  ;;  %v1149_v30 = vpop.f32.mrb[9].mxu1 }
 0x4b1   :  { %v941_v32 = vpop.f32.mrb[10].mxu1 }
 0x4b2   :  { %945 = vst [vmem:[#allocation4] sm:$0xff] %v939_v29  ;;  %v942_v33 = vadd.f32 %v941_v32, %v894_v31  ;;  %v1150_v34 = vpop.f32.mrb[11].mxu1 }
 0x4b4   :  { %946 = vst [vmem:[#allocation4 + $0x8] sm:$0xff] %v942_v33 }
 0x4b5   :  { %1274 = shalt.err (!%p1271_p12)
}
 0x4b6   :  { %s1275_s3 = scalar_lea.hbm %s1638_s13, 256 }
 0x4b7   :  { %p1276_p13 = scmp.ne.s32.totalorder %s1638_s13, %s1275_s3  ;;  %p1279_p0 = scmp.lt.u32.totalorder %s1275_s3, %s1638_s13 }
 0x4b9   :  { %p1281_p1 = pnand %p1279_p0, %p1276_p13 }
 0x4bb   :  { %1284 = shalt.err (!%p1281_p1)
}
 0x4bc   :  { %970 = dma.vmem_to_hbm [thread:$0]  %s965_s15, 256, %s1638_s13, [#allocation5], %s1294_s29, %s1294_s29, %s1295_s9  }
 0x4bd   :  { %1285 = dma.done.wait [#allocation3], 1536  }
 0x4be   :  { %1286 = vsyncadd [#allocation3], 4294965760 }
 0x4bf   :  { %1287 = dma.done.wait [#allocation5], 256  }
 0x4c0   :  { %1288 = vsyncadd [#allocation5], 4294967040 }
 0x4c1   :  { %977 = vsyncpa [#allocation3], 1 }
 0x4c2   :  { %978 = vsyncpa [#allocation5], 1 }

</bundles_post_ra>
